<compile_context>
chip_gen: v7x
topology: tpu7x:2x2x1
jax: 0.10.0
libtpu: 0.0.40
codegen_flags: <defaults>
</compile_context>

<pallas_src>
import jax
import jax.numpy as jnp
from jax.experimental import pallas as pl
from jax.experimental.pallas import tpu as pltpu


# ---------------------------------------------------------------------------
# Kernel: one (token tile, K tile) pair per grid step.
# ---------------------------------------------------------------------------
def moe_expert_kernel(tile_eids_ref, x_ref, w_ref, b_ref, o_ref, acc_ref):
    # x_ref: (tm, tk) bf16   w_ref: (tk, D) bf16   b_ref: (1, D) f32
    # o_ref: (tm, D)         acc_ref: (tm, D) f32 scratch
    k = pl.program_id(1)

    @pl.when(k == 0)
    def _init():
        acc_ref[...] = jnp.zeros_like(acc_ref)

    acc_ref[...] += jnp.dot(
        x_ref[...], w_ref[...], preferred_element_type=jnp.float32
    )

    @pl.when(k == pl.num_programs(1) - 1)
    def _finalize():
        o_ref[...] = (acc_ref[...] + b_ref[...]).astype(o_ref.dtype)


# ---------------------------------------------------------------------------
# Gate: static contiguous even split (mirrors the module's gate contract:
# a list of split sizes consumed by torch.split(..., dim=0)).
# ---------------------------------------------------------------------------
def gate(x_flat, num_experts):
    n = x_flat.shape[0]
    base = n // num_experts
    counts = [base] * num_experts
    counts[-1] += n - base * num_experts
    return counts


def _padded_layout(split_sizes, tm):
    """Pad each expert chunk up to a multiple of tm.

    Returns (src_rows, dst_rows, tile_eids):
      src_rows[p] = source row in x_flat for padded row p (pad rows -> 0)
      dst_rows[r] = padded row holding original row r
      tile_eids[t] = expert id of padded tile t
    """
    src_rows, dst_rows, tile_eids = [], [], []
    off = 0
    for e, c in enumerate(split_sizes):
        n_tiles = (c + tm - 1) // tm
        start = len(src_rows)
        src_rows += list(range(off, off + c)) + [0] * (n_tiles * tm - c)
        dst_rows += list(range(start, start + c))
        tile_eids += [e] * n_tiles
        off += c
    return src_rows, dst_rows, tile_eids


def moe_forward(x, w_t, b, split_sizes, *, tm=128, tk=None,
                compute_dtype=jnp.bfloat16):
    """MoELayer.forward: split tokens by `split_sizes`, apply expert linears,
    concatenate, reshape back to x.shape."""
    B, S, D = x.shape
    E = w_t.shape[0]
    x_flat = x.reshape(-1, D)
    N = x_flat.shape[0]
    assert len(split_sizes) == E and sum(split_sizes) == N
    assert D % 128 == 0, "d_model must be lane-aligned (multiple of 128)"

    itemsize = jax.dtypes.canonicalize_dtype(compute_dtype).itemsize
    if tk is None:
        # Keep the whole (D, D) expert weight resident (amortized DMA across
        # same-expert token tiles) when it is small; otherwise K-tile so the
        # working set fits v7x's 64 MiB VMEM at large d_model.
        tk = D if 2 * D * D * itemsize <= (16 << 20) else 512
        while D % tk != 0:
            tk //= 2
    assert D % tk == 0 and tk % 128 == 0
    num_k = D // tk

    src_rows, dst_rows, tile_eids = _padded_layout(split_sizes, tm)
    n_pad = len(src_rows)
    num_tiles = n_pad // tm
    aligned = all(c % tm == 0 for c in split_sizes)

    xc = x_flat.astype(compute_dtype)
    if not aligned:
        xc = xc[jnp.asarray(src_rows, dtype=jnp.int32)]
    wc = w_t.astype(compute_dtype)
    bf = b.astype(jnp.float32)
    tile_eids = jnp.asarray(tile_eids, dtype=jnp.int32)

    out_itemsize = jax.dtypes.canonicalize_dtype(x.dtype).itemsize
    cost = pl.CostEstimate(
        flops=2 * n_pad * D * D,
        transcendentals=0,
        bytes_accessed=(n_pad * D * (itemsize + out_itemsize)
                        + E * D * D * itemsize + E * D * 4),
    )

    out_pad = pl.pallas_call(
        moe_expert_kernel,
        out_shape=jax.ShapeDtypeStruct((n_pad, D), x.dtype),
        grid_spec=pltpu.PrefetchScalarGridSpec(
            num_scalar_prefetch=1,
            grid=(num_tiles, num_k),
            in_specs=[
                # token tile: (tm, tk)
                pl.BlockSpec((tm, tk), lambda i, k, eids: (i, k)),
                # expert weight K-slab selected by prefetched tile expert id
                pl.BlockSpec((pl.Squeezed(), tk, D),
                             lambda i, k, eids: (eids[i], k, 0)),
                # expert bias (constant across k -> revisited block)
                pl.BlockSpec((pl.Squeezed(), 1, D),
                             lambda i, k, eids: (eids[i], 0, 0)),
            ],
            out_specs=pl.BlockSpec((tm, D), lambda i, k, eids: (i, 0)),
            scratch_shapes=[pltpu.VMEM((tm, D), jnp.float32)],
        ),
        compiler_params=pltpu.CompilerParams(
            dimension_semantics=("parallel", "arbitrary"),
            vmem_limit_bytes=48 * 1024 * 1024,
        ),
        cost_estimate=cost,
    )(tile_eids, xc, wc, bf)

    out_flat = out_pad if aligned else out_pad[jnp.asarray(dst_rows, jnp.int32)]
    return out_flat.reshape(B, S, D)


def moe_reference(x, w_t, b, split_sizes, compute_dtype=jnp.bfloat16):
    """Pure-JAX reference mirroring the PyTorch forward, with the same bf16
    operand rounding as the kernel (f32 accumulation)."""
    B, S, D = x.shape
    xf = x.reshape(-1, D).astype(compute_dtype).astype(jnp.float32)
    wf = w_t.astype(compute_dtype).astype(jnp.float32)
    outs, off = [], 0
    for e, c in enumerate(split_sizes):
        if c != 0:
            outs.append(xf[off:off + c] @ wf[e] + b[e, 0])
        off += c
    return jnp.concatenate(outs, axis=0).astype(x.dtype).reshape(x.shape)


if __name__ == "__main__":
    key = jax.random.PRNGKey(0)
    k_x, k_w, k_b = jax.random.split(key, 3)

    # Small shapes consistent with the module's (B, S, d_model) input,
    # but MXU-aligned so a 128-row token tile is exercised.
    B, S, D = 2, 128, 256
    num_experts = 2

    x = jax.random.normal(k_x, (B, S, D), dtype=jnp.float32)
    # Each expert is an nn.Linear(D, D); store pre-transposed weights so the
    # kernel computes x @ W_t[e] + b[e]  (== x @ W[e].T + b[e]).
    w_t = jax.random.normal(k_w, (num_experts, D, D), dtype=jnp.float32) * 0.02
    b = jax.random.normal(k_b, (num_experts, 1, D), dtype=jnp.float32) * 0.02

    ok = True
    cases = [
        gate(x.reshape(-1, D), num_experts),  # [128, 128] tile-aligned path
        [100, 156],                           # uneven splits -> padded path
    ]
    for split_sizes in cases:
        # tk=128 forces num_k > 1 to exercise the accumulator init/finalize.
        out = moe_forward(x, w_t, b, split_sizes, tm=128, tk=128)
        out = jax.block_until_ready(out)
        ref = moe_reference(x, w_t, b, split_sizes)
        assert out.shape == x.shape
        ok = ok and bool(jnp.allclose(out, ref, atol=1e-2, rtol=1e-2))

    assert ok
    print("KERNEL_OK")
</pallas_src>

<mosaic_0001>
module attributes {stable_mosaic.version = 11 : i64} {
  func.func @moe_expert_kernel(%arg0: i32, %arg1: i32, %arg2: memref<2xi32, #tpu.memory_space<smem>>, %arg3: memref<128x128xbf16, #tpu.memory_space<vmem>>, %arg4: memref<1x128x256xbf16, #tpu.memory_space<vmem>>, %arg5: memref<1x1x256xf32, #tpu.memory_space<vmem>>, %arg6: memref<128x256xf32, #tpu.memory_space<vmem>>, %arg7: memref<128x256xf32, #tpu.memory_space<vmem>>) attributes {dimension_semantics = [#tpu.dimension_semantics<parallel>, #tpu.dimension_semantics<arbitrary>], iteration_bounds = array<i64: 2, 2>, scalar_prefetch = 1 : i64, scratch_operands = 1 : i64, tpu.core_type = #tpu.core_type<tc>, window_params = [{transform_indices = @transform_0, window_bounds = array<i64: 128, 128>}, {transform_indices = @transform_1, window_bounds = array<i64: 1, 128, 256>}, {transform_indices = @transform_2, window_bounds = array<i64: 1, 1, 256>}, {transform_indices = @transform_3, window_bounds = array<i64: 128, 256>}]} {
    %c0_i32 = arith.constant 0 : i32
    %0 = arith.cmpi eq, %arg1, %c0_i32 : i32
    %1 = arith.extui %0 : i1 to i32
    %c0_i32_0 = arith.constant 0 : i32
    %2 = arith.cmpi ne, %1, %c0_i32_0 : i32
    scf.if %2 {
      %cst_10 = arith.constant 0.000000e+00 : f32
      %13 = vector.broadcast %cst_10 : f32 to vector<128x256xf32>
      %c0_11 = arith.constant 0 : index
      %c0_12 = arith.constant 0 : index
      %14 = vector.load %arg7[%c0_11, %c0_12] : memref<128x256xf32, #tpu.memory_space<vmem>>, vector<128x256xf32>
      tpu.vector_store %arg7[%c0_11, %c0_12], %13 {strides = array<i32>} : memref<128x256xf32, #tpu.memory_space<vmem>>, vector<128x256xf32>,
    } else {
    }
    %c0 = arith.constant 0 : index
    %c0_1 = arith.constant 0 : index
    %3 = vector.load %arg7[%c0, %c0_1] : memref<128x256xf32, #tpu.memory_space<vmem>>, vector<128x256xf32>
    %c0_2 = arith.constant 0 : index
    %c0_3 = arith.constant 0 : index
    %4 = vector.load %arg3[%c0_2, %c0_3] : memref<128x128xbf16, #tpu.memory_space<vmem>>, vector<128x128xbf16>
    %c0_4 = arith.constant 0 : index
    %c0_5 = arith.constant 0 : index
    %c0_6 = arith.constant 0 : index
    %5 = vector.load %arg4[%c0_4, %c0_5, %c0_6] : memref<1x128x256xbf16, #tpu.memory_space<vmem>>, vector<1x128x256xbf16>
    %6 = vector.shape_cast %5 : vector<1x128x256xbf16> to vector<128x256xbf16>
    %cst = arith.constant dense<0.000000e+00> : vector<128x256xf32>
    %7 = tpu.matmul %4, %6, %cst {dimension_numbers = #tpu.dot_dimension_numbers<[1], [0], [0], [1], [0, 0, 1, 1], [], []>} : vector<128x128xbf16>, vector<128x256xbf16>, vector<128x256xf32> -> vector<128x256xf32>
    %8 = arith.addf %3, %7 : vector<128x256xf32>
    %c0_7 = arith.constant 0 : index
    %c0_8 = arith.constant 0 : index
    %9 = vector.load %arg7[%c0_7, %c0_8] : memref<128x256xf32, #tpu.memory_space<vmem>>, vector<128x256xf32>
    tpu.vector_store %arg7[%c0_7, %c0_8], %8 {strides = array<i32>} : memref<128x256xf32, #tpu.memory_space<vmem>>, vector<128x256xf32>,
    %c1_i32 = arith.constant 1 : i32
    %10 = arith.cmpi eq, %arg1, %c1_i32 : i32
    %11 = arith.extui %10 : i1 to i32
    %c0_i32_9 = arith.constant 0 : i32
    %12 = arith.cmpi ne, %11, %c0_i32_9 : i32
    scf.if %12 {
      %c0_10 = arith.constant 0 : index
      %c0_11 = arith.constant 0 : index
      %13 = vector.load %arg7[%c0_10, %c0_11] : memref<128x256xf32, #tpu.memory_space<vmem>>, vector<128x256xf32>
      %c0_12 = arith.constant 0 : index
      %c0_13 = arith.constant 0 : index
      %c0_14 = arith.constant 0 : index
      %14 = vector.load %arg5[%c0_12, %c0_13, %c0_14] : memref<1x1x256xf32, #tpu.memory_space<vmem>>, vector<1x1x256xf32>
      %15 = vector.shape_cast %14 : vector<1x1x256xf32> to vector<1x256xf32>
      %16 = vector.broadcast %15 : vector<1x256xf32> to vector<128x256xf32>
      %17 = arith.addf %13, %16 : vector<128x256xf32>
      %c0_15 = arith.constant 0 : index
      %c0_16 = arith.constant 0 : index
      %18 = vector.load %arg6[%c0_15, %c0_16] : memref<128x256xf32, #tpu.memory_space<vmem>>, vector<128x256xf32>
      tpu.vector_store %arg6[%c0_15, %c0_16], %17 {strides = array<i32>} : memref<128x256xf32, #tpu.memory_space<vmem>>, vector<128x256xf32>,
    } else {
    }
    return
  }
  func.func @transform_0(%arg0: i32, %arg1: i32, %arg2: memref<2xi32, #tpu.memory_space<smem>>) -> (i32, i32) {
    %c0_i32 = arith.constant 0 : i32
    return %arg0, %arg1 : i32, i32
  }
  func.func @transform_1(%arg0: i32, %arg1: i32, %arg2: memref<2xi32, #tpu.memory_space<smem>>) -> (i32, i32, i32) {
    %0 = arith.index_cast %arg0 : i32 to index
    %1 = memref.load %arg2[%0] : memref<2xi32, #tpu.memory_space<smem>>
    %c0_i32 = arith.constant 0 : i32
    %c0_i32_0 = arith.constant 0 : i32
    return %1, %arg1, %c0_i32 : i32, i32, i32
  }
  func.func @transform_2(%arg0: i32, %arg1: i32, %arg2: memref<2xi32, #tpu.memory_space<smem>>) -> (i32, i32, i32) {
    %0 = arith.index_cast %arg0 : i32 to index
    %1 = memref.load %arg2[%0] : memref<2xi32, #tpu.memory_space<smem>>
    %c0_i32 = arith.constant 0 : i32
    %c0_i32_0 = arith.constant 0 : i32
    %c0_i32_1 = arith.constant 0 : i32
    return %1, %c0_i32, %c0_i32_0 : i32, i32, i32
  }
  func.func @transform_3(%arg0: i32, %arg1: i32, %arg2: memref<2xi32, #tpu.memory_space<smem>>) -> (i32, i32) {
    %c0_i32 = arith.constant 0 : i32
    %c0_i32_0 = arith.constant 0 : i32
    return %arg0, %c0_i32 : i32, i32
  }
}

</mosaic_0001>

<bundles_post_ra>
// kernel: tpu_custom_call.1
= control target key start
LH: loop header
LB: loop body
LE: loop exit
PB: predicated region body
PF: predicated region fallthrough
CT: control target
= control target key end

     0   :  { %s1927_s0 = inlined_call_operand.hbm [shape: s32[2], index: 0, kind: input, shape index: {}]   ;;  %s1928_s1 = inlined_call_operand.hbm [shape: bf16[256,256], index: 1, kind: input, shape index: {}]   ;;  %s1929_s2 = inlined_call_operand.hbm [shape: bf16[2,256,256], index: 2, kind: input, shape index: {}]   ;;  %s1930_s3 = inlined_call_operand.vmem [shape: f32[2,1,256], index: 3, kind: input, shape index: {}]   ;;  %s1931_s4 = inlined_call_operand.hbm [shape: f32[256,256], index: 4, kind: output, shape index: {}]  }
   0x1   :  { %1944 = sst [smem:[#allocation25_spill]] %s1928_s1  ;;  %s1189_s17 = scalar_lea.hbm %s1927_s0, 16 }
   0x2   :  { %1945 = sst [smem:[#allocation26_spill]] %s1929_s2  ;;  %p1190_p0 = scmp.ne.s32.totalorder %s1927_s0, %s1189_s17 }
   0x3   :  { %1946 = sst [smem:[#allocation27_spill]] %s1930_s3  ;;  %p1193_p1 = scmp.lt.u32.totalorder %s1189_s17, %s1927_s0 }
   0x4   :  { %1947 = sst [smem:[#allocation28_spill]] %s1931_s4 }
   0x5   :  { %p1195_p2 = pnand %p1193_p1, %p1190_p0 }
   0x7   :  { %1198 = shalt.err (!%p1195_p2)  }
   0x8   :  { %s1413_s22 = smov [#allocation4]  }
   0x9   :  { %10 = dma.hbm_to_smem %s1927_s0, 16, %s1413_s22, [#allocation3] }
   0xa   :  { %1343 = dma.done.wait [#allocation3], 16 }
   0xb   :  { %1344 = vsyncadd [#allocation3], 4294967280 }
   0xc   :  { %12 = sfence }
   0xd   :  { %13 = vsyncpa [#allocation6], 0 }
   0xe   :  { %15 = vsyncpa [#allocation6 + $0x1], 0 }
   0xf   :  { %16 = vsyncpa [#allocation9], 0 }
  0x10   :  { %18 = vsyncpa [#allocation9 + $0x1], 0 }
  0x11   :  { %19 = vsyncpa [#allocation7], 0 }
  0x12   :  { %21 = vsyncpa [#allocation7 + $0x1], 0  ;;  %s1462_s25 = smov 0   ;;  %s1464_s26 = smov 0  }
  0x13   :  { %s1466_s27 = smov 0   ;;  %s1468_s28 = smov 0  }
  0x14   :  { %s1470_s29 = smov 0   ;;  %s1472_s0 = smov 0  }
  0x15   :  { %s1474_s30 = smov 0   ;;  %s1476_s5 = smov 0  }
  0x16   :  { %s1478_s6 = smov 0   ;;  %s1480_s7 = smov 0  }
  0x17   :  { %s1482_s8 = smov 0   ;;  %s1484_s9 = smov 0  }
  0x18   :  { %s1486_s10 = smov 0   ;;  %s1488_s11 = smov 0  }
  0x19 LB: > { %1948 = sst [smem:[#allocation17_spill]] %s1359_s25  ;;  %s36_s12 = sadd.s32 1, %s1403_s9  ;;  %s1411_s11 = sphi %s1488_s11, %s27_s11   ;;  %s1407_s10 = sphi %s1486_s10, %s1993_s10   ;;  %s1403_s9 = sphi %s1484_s9, %s2003_s9   ;;  %s1399_s8 = sphi %s1482_s8, %s1991_s8   ;;  %s1395_s7 = sphi %s1480_s7, %s2002_s7   ;;  %s1391_s6 = sphi %s1478_s6, %s2001_s6   ;;  %s1387_s5 = sphi %s1476_s5, %s2000_s5   ;;  %s1383_s30 = sphi %s1474_s30, %s1999_s30   ;;  %s1379_s0 = sphi %s1472_s0, %s1998_s0   ;;  %s1375_s29 = sphi %s1470_s29, %s1997_s29   ;;  %s1371_s28 = sphi %s1468_s28, %s1996_s28   ;;  %s1367_s27 = sphi %s1466_s27, %s1995_s27   ;;  %s1363_s26 = sphi %s1464_s26, %s1994_s26   ;;  %s1359_s25 = sphi %s1462_s25, %s1989_s25  }
  0x1a   : > { %1949 = sst [smem:[#allocation18_spill]] %s1363_s26  ;;  %s39_s13 = sadd.s32 1, %s1407_s10 }
  0x1b   : > { %1950 = sst [smem:[#allocation19_spill]] %s1395_s7  ;;  %p37_p3 = scmp.ge.s32.totalorder %s36_s12, 2 }
  0x1c   : > { %1951 = sst [smem:[#allocation20_spill]] %s1399_s8  ;;  %s48_s14 = sadd.s32 1, %s1391_s6 }
  0x1d   : > { %1952 = sst [smem:[#allocation21_spill]] %s1407_s10  ;;  %p55_p4 = scmp.ne.s32.totalorder %s1391_s6, %s1387_s5 }
  0x1e   : > { %p1939_p5 = scmp.eq.s32.totalorder %s1411_s11, 0  ;;  %s2005_s12 = smov (%p37_p3, %s36_s12), 0 }
  0x1f   : > { %1953 = sst [smem:[#allocation22_spill]] %s2005_s12  ;;  %s2007_s13 = smov (!%p37_p3, %s39_s13), %s1407_s10 }
  0x20   : > { %s44_s15 = ssub.s32 %s1403_s9, %s2005_s12  ;;  %p1545_p6 = por %p1939_p5, %p55_p4 }
  0x21   : > { %p41_p7 = scmp.ge.s32.totalorder %s2007_s13, 2  ;;  %s71_s17 = sld [smem:[#allocation4 + %s1407_s10]] }
  0x22   : > { %s132_s18 = sadd.s32 1, %s1367_s27  ;;  %p1938_p9 = scmp.lt.s32.totalorder %s1411_s11, 4 }
  0x23   : > { %s2009_s13 = smov (%p41_p7, %s2007_s13), 0  ;;  %s169_s22 = sand.u32 1, %s1391_s6  }
  0x24   : > { %1955 = sst [smem:[#allocation23_spill]] %s2009_s13  ;;  %s43_s19 = ssub.s32 %s1407_s10, %s2009_s13 }
  0x25   : > { %s72_s20 = sld [smem:[#allocation4 + %s2009_s13]]  ;;  %s45_s21 = sor.u32 %s44_s15, %s43_s19 }
  0x26   : > { %p130_p10 = scmp.eq.s32.totalorder %s43_s19, 0  ;;  %p46_p11 = scmp.eq.s32.totalorder %s45_s21, 0 }
  0x27   : > { %s947_s12 = sshll.u32 %s169_s22, 6  ;;  %s993_s3 = sshll.u32 %s1407_s10, 5 }
  0x28   : > { %s1561_s23 = scalar_select %p130_p10, %s1367_s27, %s132_s18  }
  0x29   : > { %s1564_s24 = scalar_select %p46_p11, %s1391_s6, %s48_s14  }
  0x2a   : > { %s179_s8 = sadd.s32 %s1403_s9, %s993_s3  ;;  %s173_s2 = scalar_lea.vmem [#allocation5], %s947_s12 }
  0x2b   : > { %1956 = sst [smem:[#allocation24_spill]] %s1564_s24  ;;  %s73_s4 = ssub.s32 %s71_s17, %s72_s20 }
  0x2c   : > { %s1566_s7 = sor.u32 %s73_s4, %s44_s15  ;;  %s950_s13 = sshll.u32 %s179_s8, 6 }
  0x2d   : > { %s182_s19 = sshll.u32 %s173_s2, 4  ;;  %s1957_s1 = sld [smem:[#allocation25_spill]]  ;;  %s1576_s19 = int_to_ptr.vmem [resolvable:$true] %s182_s19 }
  0x2e   : > { %p1582_p13 = pnand %p1938_p9, %p1545_p6  ;;  %p956_p0 = scmp.ge.s32.totalorder %s1411_s11, 1 }
  0x2f   : > { %s1587_s2 = scalar_lea.sflag [#allocation6], %s169_s22 }
  0x30   : > { %p1201_p2 = pneg %p1582_p13 }
  0x33   : > { %s1574_s21 = scalar_lea.hbm %s1957_s1, %s950_s13  ;;  %s1204_s8 = scalar_lea.hbm %s1957_s1, 4096 }
  0x34   : > { %s1199_s3 = scalar_lea.hbm %s1574_s21, 1024  ;;  %p1205_p6 = scmp.lt.u32.totalorder %s1574_s21, %s1957_s1 }
  0x35   : > { %p1200_p1 = scmp.ne.s32.totalorder %s1574_s21, %s1199_s3  ;;  %p1206_p7 = scmp.lt.u32.totalorder %s1204_s8, %s1199_s3 }
  0x36   : > { %p1208_p11 = scmp.lt.u32.totalorder %s1199_s3, %s1574_s21 }
  0x37   : > { %p1202_p3 = pnand %p1201_p2, %p1200_p1  ;;  %p1207_p10 = por %p1206_p7, %p1205_p6 }
  0x39   : > { %p1203_p4 = pneg %p1202_p3  ;;  %p1209_p9 = por %p1208_p11, %p1207_p10 }
  0x3b   : > { %p1210_p5 = pnand %p1209_p9, %p1203_p4 }
  0x3d   : > { %1213 = shalt.err (!%p1210_p5)
}
  0x3e   : > { %s1214_s14 = scalar_lea.vmem %s1576_s19, 1024  ;;  %s1414_s15 = smov [#allocation5]  }
  0x3f   : > { %p1215_p1 = scmp.ne.s32.totalorder %s1576_s19, %s1214_s14  ;;  %s1219_s16 = sshll.u32 %s1414_s15, 4  ;;  %s1220_s16 = int_to_ptr.vmem [resolvable:$false] %s1219_s16 }
  0x40   : > { %s1221_s17 = scalar_lea.vmem %s1220_s16, 2048  ;;  %p1222_p12 = scmp.lt.s32.totalorder %s1576_s19, %s1220_s16 }
  0x41   : > { %p1217_p3 = pnand %p1215_p1, %p1201_p2  ;;  %p1223_p6 = scmp.lt.s32.totalorder %s1221_s17, %s1214_s14 }
  0x43   : > { %p1218_p8 = pneg %p1217_p3  ;;  %p1224_p7 = por %p1223_p6, %p1222_p12 }
  0x45   : > { %p1225_p10 = pnand %p1224_p7, %p1218_p8 }
  0x47   : > { %1228 = shalt.err (!%p1225_p10)
}
  0x48   : > { %s1941_s18 = smov 128   ;;  %s1959_s20 = sld [smem:[#allocation18_spill]] }
  0x49   : > { %s1416_s22 = smov 64   ;;  %s1960_s3 = sld [smem:[#allocation17_spill]] }
  0x4a   : > { %s1417_s25 = smov 4   ;;  %p224_p5 = scmp.lt.s32.totalorder %s1411_s11, 5 }
  0x4b   : > { %1024 = dma.hbm_to_vmem [thread:$0]  (!%p1582_p13), %s1574_s21, 1024, %s1576_s19, %s1587_s2, %s1941_s18, %s1416_s22, %s1417_s25  }
  0x4c   : > { %p1619_p8 = pnand %p956_p0, %p224_p5  ;;  %s943_s8 = sadd.s32 4294967295, %s1411_s11  }
  0x4d   : > { %s944_s12 = sadd.s32 4294967294, %s1411_s11   ;;  %p62_p9 = scmp.eq.s32.totalorder %s943_s8, 0 }
  0x4e   : > { %s1961_s26 = scalar_select %p1619_p8, 1, 0 }
  0x4f   : > { %s78_s13 = sadd.s32 1, %s1379_s0  ;;  %p1962_p12 = scmp.eq.s32.totalorder %s1566_s7, 0 }
  0x50   : > { %p1963_p2 = scmp.ne.s32.totalorder %s1387_s5, %s1383_s30  ;;  %p85_p13 = scmp.ne.s32.totalorder %s1379_s0, %s1375_s29 }
  0x51   : > { %s1629_s14 = scalar_select %p1962_p12, %s1379_s0, %s78_s13  }
  0x52   : > { %p1634_p4 = por %p62_p9, %p1963_p2  ;;  %p91_p0 = scmp.ne.s32.totalorder %s1375_s29, %s1371_s28 }
  0x53   : > { %p142_p11 = scmp.ne.s32.totalorder %s1367_s27, %s1959_s20  ;;  %p143_p1 = scmp.eq.s32.totalorder %s943_s8, 3 }
  0x54   : > { %s1964_s19 = scalar_select %p1634_p4, 1, 0 }
  0x55   : > { %p1644_p3 = por %p91_p0, %p62_p9  ;;  %p148_p6 = scmp.ne.s32.totalorder %s1959_s20, %s1960_s3 }
  0x56   : > { %p1650_p7 = por %p143_p1, %p142_p11  ;;  %p149_p10 = scmp.eq.s32.totalorder %s944_s12, 3 }
  0x57   : > { %p1967_p5 = scmp.eq.s32.totalorder %s1411_s11, 0  ;;  %s192_s30 = sand.u32 1, %s1379_s0  }
  0x58   : > { %s1966_s7 = scalar_select %p1650_p7, 1, 0 }
  0x59   : > { %p87_p12 = por %p85_p13, %p1967_p5  ;;  %p1657_p2 = por %p149_p10, %p148_p6 }
  0x5a   : > { %s951_s28 = sshll.u32 %s192_s30, 7  ;;  %p1969_p4 = scmp.lt.s32.totalorder %s1411_s11, 4 }
  0x5b   : > { %s1968_s4 = scalar_select %p1657_p2, 1, 0 }
  0x5c   : > { %p1663_p8 = pnand %p1969_p4, %p87_p12  ;;  %p1971_p9 = pmov %p1969_p4 }
  0x5d   : > { %s1014_s15 = scalar_select %p87_p12, [#allocation4], [#allocation11] }
  0x5e   : > { %s1015_s16 = scalar_select %p87_p12, %s1407_s10, 0 }
  0x5f   : > { %s2011_s15 = smov (!%p1971_p9, %s1014_s15), [#allocation12]  ;;  %p1972_p0 = pmov %p1969_p4 }
  0x60   : > { %s994_s20 = sshll.u32 %s1403_s9, 5  ;;  %s196_s22 = scalar_lea.vmem [#allocation8], %s951_s28 }
  0x61   : > { %s2013_s16 = smov (!%p1972_p0, %s1015_s16), 0  ;;  %s207_s3 = sshll.u32 %s196_s22, 4  ;;  %s1673_s3 = int_to_ptr.vmem [resolvable:$true] %s207_s3 }
  0x62   : > { %s197_s17 = sld [smem:[%s2011_s15 + %s2013_s16]]  ;;  %s1680_s10 = scalar_lea.sflag [#allocation9], %s192_s30 }
  0x63   : > { %s1973_s1 = sld [smem:[#allocation26_spill]]  ;;  %p1231_p13 = pneg %p1663_p8 }
  0x68   : > { %s954_s25 = sshll.u32 %s197_s17, 6 }
  0x69   : > { %s204_s8 = sadd.s32 %s994_s20, %s954_s25  ;;  %s1234_s18 = scalar_lea.hbm %s1973_s1, 8192 }
  0x6a   : > { %s955_s12 = sshll.u32 %s204_s8, 6 }
  0x6b   : > { %s1678_s24 = scalar_lea.hbm %s1973_s1, %s955_s12 }
  0x6c   : > { %s1229_s15 = scalar_lea.hbm %s1678_s24, 2048  ;;  %p1235_p6 = scmp.lt.u32.totalorder %s1678_s24, %s1973_s1 }
  0x6d   : > { %p1230_p4 = scmp.ne.s32.totalorder %s1678_s24, %s1229_s15  ;;  %p1236_p10 = scmp.lt.u32.totalorder %s1234_s18, %s1229_s15 }
  0x6e   : > { %p1238_p12 = scmp.lt.u32.totalorder %s1229_s15, %s1678_s24 }
  0x6f   : > { %p1232_p11 = pnand %p1231_p13, %p1230_p4  ;;  %p1237_p5 = por %p1236_p10, %p1235_p6 }
  0x71   : > { %p1233_p1 = pneg %p1232_p11  ;;  %p1239_p9 = por %p1238_p12, %p1237_p5 }
  0x73   : > { %p1240_p0 = pnand %p1239_p9, %p1233_p1 }
  0x75   : > { %1243 = shalt.err (!%p1240_p0)
}
  0x76   : > { %s1244_s30 = scalar_lea.vmem %s1673_s3, 2048  ;;  %s1418_s22 = smov [#allocation8]  }
  0x77   : > { %p1245_p4 = scmp.ne.s32.totalorder %s1673_s3, %s1244_s30  ;;  %s1249_s25 = sshll.u32 %s1418_s22, 4  ;;  %s1250_s25 = int_to_ptr.vmem [resolvable:$false] %s1249_s25 }
  0x78   : > { %s1251_s8 = scalar_lea.vmem %s1250_s25, 4096  ;;  %p1252_p7 = scmp.lt.s32.totalorder %s1673_s3, %s1250_s25 }
  0x79   : > { %p1247_p11 = pnand %p1245_p4, %p1231_p13  ;;  %p1253_p6 = scmp.lt.s32.totalorder %s1251_s8, %s1244_s30 }
  0x7b   : > { %p1248_p2 = pneg %p1247_p11  ;;  %p1254_p10 = por %p1253_p6, %p1252_p7 }
  0x7d   : > { %p1255_p5 = pnand %p1254_p10, %p1248_p2 }
  0x7f   : > { %1258 = shalt.err (!%p1255_p5)
}
  0x80   : > { %s1419_s12 = smov 8   ;;  %s1974_s13 = smov 128  }
  0x81   : > { %1029 = dma.hbm_to_vmem [thread:$0]  (!%p1663_p8), %s1678_s24, 2048, %s1673_s3, %s1680_s10, %s1974_s13, %s1974_s13, %s1419_s12  }
  0x82   : > { %p1975_p13 = scmp.ne.s32.totalorder %s1961_s26, 0 }
  0x83   : > { %s230_s15 = sand.u32 (!%p1975_p13), 1, %s1387_s5   ;;  %p1976_p7 = scmp.ne.s32.totalorder (!%p1975_p13), %s1964_s19, 0 }
  0x84   : > { %228 = sbr.rel (%p1975_p13) target bundleno = 486 (0x1e6), region = 32  ;;  %s957_s28 = sshll.u32 (!%p1975_p13), %s230_s15, 6 }
  0x85   : > { %s231_s16 = scalar_lea.sflag (!%p1975_p13), [#allocation6], %s230_s15  ;;  %s1713_s18 = scalar_lea.vmem (!%p1975_p13), [#allocation5], %s957_s28 }
  0x8b   : > { %1346 = dma.done.wait (%p1976_p7), %s231_s16, 1024  }
  0x8c   : > { %1348 = vsyncadd (%p1976_p7), %s231_s16, 4294966272  ;;  %s239_s2 = sand.u32 1, %s1375_s29  }
  0x8d   : > { %s958_s17 = sshll.u32 %s239_s2, 7  ;;  %s240_s10 = scalar_lea.sflag [#allocation9], %s239_s2 }
  0x8e   : > { %s1720_s24 = scalar_lea.vmem [#allocation8], %s958_s17 }
  0x8f   : > { %1350 = dma.done.wait (%p1644_p3), %s240_s10, 2048  }
  0x90   : > { %1352 = vsyncadd (%p1644_p3), %s240_s10, 4294965248  ;;  %s1977_s26 = sld [smem:[#allocation18_spill]]  ;;  %s1978_s3 = sld [smem:[#allocation20_spill]] }
  0x91   : > { %s1979_s12 = sld [smem:[#allocation27_spill]] }
  0x92   : > { %s1980_s28 = sld [smem:[#allocation19_spill]] }
  0x96   : > { %s273_s20 = sand.u32 1, %s1977_s26   ;;  %s279_s30 = sld [smem:[#allocation4 + %s1978_s3]] }
  0x97   : > { %s959_s19 = sshll.u32 %s273_s20, 8 }
  0x98   : > { %s1735_s15 = scalar_lea.vmem [#allocation10], %s959_s19  ;;  %p961_p2 = scmp.ne.s32.totalorder %s1980_s28, 0 }
  0x99   : > { %v1420_v0 = vmov (!%p961_p2), 0.0  }
  0x9a   : > { %290 = sbr.rel (%p961_p2) target bundleno = 170 (0xaa), region = 44  ;;  %291 = vst [vmem:[#allocation2] sm:$0xff] (!%p961_p2), %v1420_v0  ;;  %292 = vst [vmem:[#allocation2 + $0x8] sm:$0xff] (!%p961_p2), %v1420_v0 }
  0x9b   : > { %293 = vst [vmem:[#allocation2 + $0x10] sm:$0xff] (!%p961_p2), %v1420_v0  ;;  %294 = vst [vmem:[#allocation2 + $0x18] sm:$0xff] (!%p961_p2), %v1420_v0 }
  0x9c   : > { %p280_p8 = scmp.lt.s32.totalorder %s279_s30, 1  ;;  %295 = vst [vmem:[#allocation2 + $0x20] sm:$0xff] (!%p961_p2), %v1420_v0  ;;  %296 = vst [vmem:[#allocation2 + $0x28] sm:$0xff] (!%p961_p2), %v1420_v0 }
  0x9d   : > { %297 = vst [vmem:[#allocation2 + $0x30] sm:$0xff] (!%p961_p2), %v1420_v0  ;;  %298 = vst [vmem:[#allocation2 + $0x38] sm:$0xff] (!%p961_p2), %v1420_v0 }
  0x9e   : > { %s2015_s30 = smov (!%p280_p8, %s279_s30), 1  ;;  %299 = vst [vmem:[#allocation2 + $0x40] sm:$0xff] (!%p961_p2), %v1420_v0  ;;  %300 = vst [vmem:[#allocation2 + $0x48] sm:$0xff] (!%p961_p2), %v1420_v0 }
  0x9f   : > { %s960_s22 = sshll.u32 %s2015_s30, 1  ;;  %301 = vst [vmem:[#allocation2 + $0x50] sm:$0xff] (!%p961_p2), %v1420_v0  ;;  %302 = vst [vmem:[#allocation2 + $0x58] sm:$0xff] (!%p961_p2), %v1420_v0 }
  0xa0   : > { %s1733_s13 = scalar_lea.vmem %s1979_s12, %s960_s22  ;;  %303 = vst [vmem:[#allocation2 + $0x60] sm:$0xff] (!%p961_p2), %v1420_v0  ;;  %304 = vst [vmem:[#allocation2 + $0x68] sm:$0xff] (!%p961_p2), %v1420_v0 }
  0xa1   : > { %305 = vst [vmem:[#allocation2 + $0x70] sm:$0xff] %v1420_v0  ;;  %306 = vst [vmem:[#allocation2 + $0x78] sm:$0xff] %v1420_v0 }
  0xa2   : > { %307 = vst [vmem:[#allocation2 + $0x80] sm:$0xff] %v1420_v0  ;;  %308 = vst [vmem:[#allocation2 + $0x88] sm:$0xff] %v1420_v0 }
  0xa3   : > { %309 = vst [vmem:[#allocation2 + $0x90] sm:$0xff] %v1420_v0  ;;  %310 = vst [vmem:[#allocation2 + $0x98] sm:$0xff] %v1420_v0 }
  0xa4   : > { %311 = vst [vmem:[#allocation2 + $0xa0] sm:$0xff] %v1420_v0  ;;  %312 = vst [vmem:[#allocation2 + $0xa8] sm:$0xff] %v1420_v0 }
  0xa5   : > { %313 = vst [vmem:[#allocation2 + $0xb0] sm:$0xff] %v1420_v0  ;;  %314 = vst [vmem:[#allocation2 + $0xb8] sm:$0xff] %v1420_v0 }
  0xa6   : > { %315 = vst [vmem:[#allocation2 + $0xc0] sm:$0xff] %v1420_v0  ;;  %316 = vst [vmem:[#allocation2 + $0xc8] sm:$0xff] %v1420_v0 }
  0xa7   : > { %317 = vst [vmem:[#allocation2 + $0xd0] sm:$0xff] %v1420_v0  ;;  %318 = vst [vmem:[#allocation2 + $0xd8] sm:$0xff] %v1420_v0 }
  0xa8   : > { %319 = vst [vmem:[#allocation2 + $0xe0] sm:$0xff] %v1420_v0  ;;  %320 = vst [vmem:[#allocation2 + $0xe8] sm:$0xff] %v1420_v0 }
  0xa9   : > { %321 = vst [vmem:[#allocation2 + $0xf0] sm:$0xff] %v1420_v0  ;;  %322 = vst [vmem:[#allocation2 + $0xf8] sm:$0xff] %v1420_v0 }
  0xaa PF: > { %v1157_v1 = vld [vmem:[%s1720_s24 + $0x4] ss:$8 sps:$4 sm:$0xff]   ;;  %v1159_v2 = vld [vmem:[%s1720_s24] ss:$8 sps:$4 sm:$0xff]   ;;  %v1421_v3 = vmov 0   ;;  %v1185_v22 = vld [vmem:[%s1713_s18 + $0x10] sm:$0xff]  }
  0xab   : > { %547 = vmatprep.mubr.bf16.mxu0 %v1421_v3  ;;  %587 = vmatprep.mubr.bf16.mxu1 %v1421_v3  ;;  %v1160_v4 = vld [vmem:[%s1720_s24 + $0x14] ss:$8 sps:$4 sm:$0xff]   ;;  %v1162_v5 = vld [vmem:[%s1720_s24 + $0x10] ss:$8 sps:$4 sm:$0xff]   ;;  %v1163_v6 = vld [vmem:[%s1720_s24 + $0x24] ss:$8 sps:$4 sm:$0xff]  }
  0xac   : > { %515 = vmatprep.subr.bf16.mxu0 %v1157_v1  ;;  %997 = vmatprep.subr.bf16.mxu1 %v1157_v1  ;;  %v1165_v7 = vld [vmem:[%s1720_s24 + $0x20] ss:$8 sps:$4 sm:$0xff]   ;;  %v1166_v8 = vld [vmem:[%s1720_s24 + $0x34] ss:$8 sps:$4 sm:$0xff]   ;;  %v1168_v9 = vld [vmem:[%s1720_s24 + $0x30] ss:$8 sps:$4 sm:$0xff]  }
  0xad   : > { %516 = vmatpush1.bf16.msra.mxu0 %v1159_v2  ;;  %1005 = vmatpush1.bf16.msra.mxu1 %v1159_v2  ;;  %v1169_v10 = vld [vmem:[%s1720_s24 + $0x44] ss:$8 sps:$4 sm:$0xff]   ;;  %v1171_v11 = vld [vmem:[%s1720_s24 + $0x40] ss:$8 sps:$4 sm:$0xff]   ;;  %v1172_v12 = vld [vmem:[%s1720_s24 + $0x54] ss:$8 sps:$4 sm:$0xff]  }
  0xae   : > { %517 = vmatprep.subr.bf16.mxu0 %v1160_v4  ;;  %998 = vmatprep.subr.bf16.mxu1 %v1160_v4  ;;  %v1174_v13 = vld [vmem:[%s1720_s24 + $0x50] ss:$8 sps:$4 sm:$0xff]   ;;  %v1175_v14 = vld [vmem:[%s1720_s24 + $0x64] ss:$8 sps:$4 sm:$0xff]   ;;  %v1177_v15 = vld [vmem:[%s1720_s24 + $0x60] ss:$8 sps:$4 sm:$0xff]  }
  0xaf   : > { %v1178_v16 = vld [vmem:[%s1720_s24 + $0x74] ss:$8 sps:$4 sm:$0xff]   ;;  %v1180_v17 = vld [vmem:[%s1720_s24 + $0x70] ss:$8 sps:$4 sm:$0xff]   ;;  %v1181_v18 = vld [vmem:[%s1713_s18] sm:$0xff]   ;;  %s1981_s21 = sld [smem:[#allocation19_spill]] }
  0xb0   : > { %v1182_v19 = vld [vmem:[%s1713_s18 + $0x20] sm:$0xff]   ;;  %v1183_v20 = vld [vmem:[%s1713_s18 + $0x8] sm:$0xff]   ;;  %v1186_v23 = vld [vmem:[%s1713_s18 + $0x30] sm:$0xff]  }
  0xb1   : > { %518 = vmatpush1.bf16.msra.mxu0 %v1162_v5  ;;  %1006 = vmatpush1.bf16.msra.mxu1 %v1162_v5  ;;  %v1184_v21 = vld [vmem:[%s1713_s18 + $0x28] sm:$0xff]   ;;  %v1187_v24 = vld [vmem:[%s1713_s18 + $0x18] sm:$0xff]   ;;  %v323_v26 = vld [vmem:[#allocation2] sm:$0xff] }
  0xb2   : > { %519 = vmatprep.subr.bf16.mxu0 %v1163_v6  ;;  %999 = vmatprep.subr.bf16.mxu1 %v1163_v6  ;;  %v1188_v25 = vld [vmem:[%s1713_s18 + $0x38] sm:$0xff]   ;;  %v339_v27 = vld [vmem:[#allocation2 + $0x80] sm:$0xff]  ;;  %v324_v28 = vld [vmem:[#allocation2 + $0x8] sm:$0xff] }
  0xb3   : > { %v340_v29 = vld [vmem:[#allocation2 + $0x88] sm:$0xff]  ;;  %v325_v32 = vld [vmem:[#allocation2 + $0x10] sm:$0xff]  ;;  %v326_v38 = vld [vmem:[#allocation2 + $0x18] sm:$0xff] }
  0xb4   : > { %v341_v33 = vld [vmem:[#allocation2 + $0x90] sm:$0xff]  ;;  %v342_v39 = vld [vmem:[#allocation2 + $0x98] sm:$0xff]  ;;  %v327_v50 = vld [vmem:[#allocation2 + $0x20] sm:$0xff] }
  0xb5   : > { %520 = vmatpush1.bf16.msra.mxu0 %v1165_v7  ;;  %1007 = vmatpush1.bf16.msra.mxu1 %v1165_v7  ;;  %v343_v51 = vld [vmem:[#allocation2 + $0xa0] sm:$0xff]  ;;  %v328_v52 = vld [vmem:[#allocation2 + $0x28] sm:$0xff]  ;;  %v329_v56 = vld [vmem:[#allocation2 + $0x30] sm:$0xff]  ;;  %p986_p3 = scmp.ne.s32.totalorder %s1981_s21, 1 }
  0xb6   : > { %521 = vmatprep.subr.bf16.mxu0 %v1166_v8  ;;  %1000 = vmatprep.subr.bf16.mxu1 %v1166_v8  ;;  %v344_v53 = vld [vmem:[#allocation2 + $0xa8] sm:$0xff]  ;;  %v345_v57 = vld [vmem:[#allocation2 + $0xb0] sm:$0xff]  ;;  %v330_v62 = vld [vmem:[#allocation2 + $0x38] sm:$0xff] }
  0xb7   : > { %v346_v63 = vld [vmem:[#allocation2 + $0xb8] sm:$0xff] }
  0xb9   : > { %522 = vmatpush1.bf16.msra.mxu0 %v1168_v9  ;;  %1008 = vmatpush1.bf16.msra.mxu1 %v1168_v9 }
  0xba   : > { %523 = vmatprep.subr.bf16.mxu0 %v1169_v10  ;;  %1001 = vmatprep.subr.bf16.mxu1 %v1169_v10  ;;  %v331_v10 = vld [vmem:[#allocation2 + $0x40] sm:$0xff] }
  0xbd   : > { %524 = vmatpush1.bf16.msra.mxu0 %v1171_v11  ;;  %1009 = vmatpush1.bf16.msra.mxu1 %v1171_v11  ;;  %v347_v11 = vld [vmem:[#allocation2 + $0xc0] sm:$0xff] }
  0xbe   : > { %525 = vmatprep.subr.bf16.mxu0 %v1172_v12  ;;  %1002 = vmatprep.subr.bf16.mxu1 %v1172_v12  ;;  %v332_v12 = vld [vmem:[#allocation2 + $0x48] sm:$0xff] }
  0xc1   : > { %526 = vmatpush1.bf16.msra.mxu0 %v1174_v13  ;;  %1010 = vmatpush1.bf16.msra.mxu1 %v1174_v13  ;;  %v348_v13 = vld [vmem:[#allocation2 + $0xc8] sm:$0xff] }
  0xc2   : > { %527 = vmatprep.subr.bf16.mxu0 %v1175_v14  ;;  %1003 = vmatprep.subr.bf16.mxu1 %v1175_v14 }
  0xc5   : > { %528 = vmatpush1.bf16.msra.mxu0 %v1177_v15  ;;  %1011 = vmatpush1.bf16.msra.mxu1 %v1177_v15 }
  0xc6   : > { %529 = vmatprep.subr.bf16.mxu0 %v1178_v16  ;;  %1004 = vmatprep.subr.bf16.mxu1 %v1178_v16  ;;  %v333_v16 = vld [vmem:[#allocation2 + $0x50] sm:$0xff] }
  0xc9   : > { %530 = vmatpush1.bf16.msra.mxu0 %v1180_v17  ;;  %1012 = vmatpush1.bf16.msra.mxu1 %v1180_v17  ;;  %v349_v17 = vld [vmem:[#allocation2 + $0xd0] sm:$0xff] }
  0xcc   : > { %548 = vmatmul.mubr.bf16.vlgmr.msra.gmra.mrb[0].mxu0 %v1181_v18  ;;  %588 = vmatmul.mubr.bf16.vlgmr.msra.gmra.mrb[0].mxu1 %v1182_v19 }
  0xcd   : > { %557 = vmatprep.mubr.bf16.mxu0 %v1421_v3  ;;  %597 = vmatprep.mubr.bf16.mxu1 %v1421_v3 }
  0xd4   : > { %558 = vmatmul.mubr.bf16.gmra.mrb[4].mxu0 %v1183_v20  ;;  %598 = vmatmul.mubr.bf16.gmra.mrb[4].mxu1 %v1184_v21 }
  0xd5   : > { %567 = vmatprep.mubr.bf16.mxu0 %v1421_v3  ;;  %607 = vmatprep.mubr.bf16.mxu1 %v1421_v3 }
  0xdc   : > { %568 = vmatmul.mubr.bf16.gmra.mrb[8].mxu0 %v1185_v22  ;;  %608 = vmatmul.mubr.bf16.gmra.mrb[8].mxu1 %v1186_v23  ;;  %v334_v22 = vld [vmem:[#allocation2 + $0x58] sm:$0xff] }
  0xdd   : > { %577 = vmatprep.mubr.bf16.mxu0 %v1421_v3  ;;  %617 = vmatprep.mubr.bf16.mxu1 %v1421_v3  ;;  %v350_v23 = vld [vmem:[#allocation2 + $0xd8] sm:$0xff] }
  0xe4   : > { %578 = vmatmul.mubr.bf16.gmra.mrb[12].mxu0 %v1187_v24  ;;  %618 = vmatmul.mubr.bf16.gmra.mrb[12].mxu1 %v1188_v25 }
 0x19f   : > { %v549_v30 = vpop.f32.mrb[0].mxu0  ;;  %v589_v31 = vpop.f32.mrb[0].mxu1 }
 0x1a0   : > { %v628_v34 = vadd.f32 %v549_v30, %v323_v26  ;;  %v644_v35 = vadd.f32 %v589_v31, %v339_v27  ;;  %v551_v36 = vpop.f32.mrb[1].mxu0  ;;  %v591_v37 = vpop.f32.mrb[1].mxu1 }
 0x1a1   : > { %v629_v40 = vadd.f32 %v551_v36, %v324_v28  ;;  %v645_v41 = vadd.f32 %v591_v37, %v340_v29  ;;  %v553_v42 = vpop.f32.mrb[2].mxu0  ;;  %v593_v43 = vpop.f32.mrb[2].mxu1  ;;  %v336_v36 = vld [vmem:[#allocation2 + $0x68] sm:$0xff] }
 0x1a2   : > { %660 = vst [vmem:[#allocation2] sm:$0xff] %v628_v34  ;;  %676 = vst [vmem:[#allocation2 + $0x80] sm:$0xff] %v644_v35  ;;  %v630_v44 = vadd.f32 %v553_v42, %v325_v32  ;;  %v646_v45 = vadd.f32 %v593_v43, %v341_v33  ;;  %v555_v46 = vpop.f32.mrb[3].mxu0  ;;  %v595_v47 = vpop.f32.mrb[3].mxu1  ;;  %v335_v34 = vld [vmem:[#allocation2 + $0x60] sm:$0xff]  ;;  %v352_v37 = vld [vmem:[#allocation2 + $0xe8] sm:$0xff] }
 0x1a3   : > { %661 = vst [vmem:[#allocation2 + $0x8] sm:$0xff] %v629_v40  ;;  %677 = vst [vmem:[#allocation2 + $0x88] sm:$0xff] %v645_v41  ;;  %v631_v48 = vadd.f32 %v555_v46, %v326_v38  ;;  %v647_v49 = vadd.f32 %v595_v47, %v342_v39  ;;  %v351_v35 = vld [vmem:[#allocation2 + $0xe0] sm:$0xff]  ;;  %v337_v40 = vld [vmem:[#allocation2 + $0x70] sm:$0xff] }
 0x1a4   : > { %662 = vst [vmem:[#allocation2 + $0x10] sm:$0xff] %v630_v44  ;;  %678 = vst [vmem:[#allocation2 + $0x90] sm:$0xff] %v646_v45  ;;  %v353_v41 = vld [vmem:[#allocation2 + $0xf0] sm:$0xff]  ;;  %v338_v46 = vld [vmem:[#allocation2 + $0x78] sm:$0xff] }
 0x1a5   : > { %663 = vst [vmem:[#allocation2 + $0x18] sm:$0xff] %v631_v48  ;;  %679 = vst [vmem:[#allocation2 + $0x98] sm:$0xff] %v647_v49  ;;  %v354_v47 = vld [vmem:[#allocation2 + $0xf8] sm:$0xff] }
 0x1a7   : > { %v559_v54 = vpop.f32.mrb[4].mxu0  ;;  %v599_v55 = vpop.f32.mrb[4].mxu1 }
 0x1a8   : > { %v632_v58 = vadd.f32 %v559_v54, %v327_v50  ;;  %v648_v59 = vadd.f32 %v599_v55, %v343_v51  ;;  %v561_v60 = vpop.f32.mrb[5].mxu0  ;;  %v601_v61 = vpop.f32.mrb[5].mxu1 }
 0x1a9   : > { %v633_v0 = vadd.f32 %v561_v60, %v328_v52  ;;  %v649_v1 = vadd.f32 %v601_v61, %v344_v53  ;;  %v563_v2 = vpop.f32.mrb[6].mxu0  ;;  %v603_v3 = vpop.f32.mrb[6].mxu1  ;;  %v696_v61 = vld [vmem:[#allocation2] sm:$0xff] (!%p986_p3) }
 0x1aa   : > { %664 = vst [vmem:[#allocation2 + $0x20] sm:$0xff] %v632_v58  ;;  %680 = vst [vmem:[#allocation2 + $0xa0] sm:$0xff] %v648_v59  ;;  %v634_v4 = vadd.f32 %v563_v2, %v329_v56  ;;  %v650_v5 = vadd.f32 %v603_v3, %v345_v57  ;;  %v565_v6 = vpop.f32.mrb[7].mxu0  ;;  %v605_v7 = vpop.f32.mrb[7].mxu1  ;;  %v730_v58 = vlaneseq (!%p986_p3)  ;;  %v728_v59 = vld [vmem:[%s1733_s13] sm:$0x3] (!%p986_p3) }
 0x1ab   : > { %665 = vst [vmem:[#allocation2 + $0x28] sm:$0xff] %v633_v0  ;;  %681 = vst [vmem:[#allocation2 + $0xa8] sm:$0xff] %v649_v1  ;;  %v635_v8 = vadd.f32 %v565_v6, %v330_v62  ;;  %v651_v9 = vadd.f32 %v605_v7, %v346_v63  ;;  %v697_v62 = vld [vmem:[#allocation2 + $0x8] sm:$0xff] (!%p986_p3)  ;;  %v698_v63 = vld [vmem:[#allocation2 + $0x10] sm:$0xff] (!%p986_p3) }
 0x1ac   : > { %666 = vst [vmem:[#allocation2 + $0x30] sm:$0xff] %v634_v4  ;;  %682 = vst [vmem:[#allocation2 + $0xb0] sm:$0xff] %v650_v5  ;;  %v731_v60 = vshrl.u32 (!%p986_p3), %v730_v58, 7  ;;  %v699_v0 = vld [vmem:[#allocation2 + $0x18] sm:$0xff] (!%p986_p3) }
 0x1ad   : > { %667 = vst [vmem:[#allocation2 + $0x38] sm:$0xff] %v635_v8  ;;  %683 = vst [vmem:[#allocation2 + $0xb8] sm:$0xff] %v651_v9 }
 0x1ae   : > { %v732_v1 = vsub.s32 (!%p986_p3), 0, %v731_v60  ;;  %v736_v2 = vsub.s32 (!%p986_p3), 1, %v731_v60 }
 0x1af   : > { %v569_v14 = vpop.f32.mrb[8].mxu0  ;;  %v609_v15 = vpop.f32.mrb[8].mxu1 }
 0x1b0   : > { %v636_v18 = vadd.f32 %v569_v14, %v331_v10  ;;  %v652_v19 = vadd.f32 %v609_v15, %v347_v11  ;;  %v571_v20 = vpop.f32.mrb[9].mxu0  ;;  %v611_v21 = vpop.f32.mrb[9].mxu1  ;;  %v1772_v10 = vrot.slane (!%p986_p3), %v728_v59, %v732_v1  ;;  %v1774_v11 = vrot.slane (!%p986_p3), %v728_v59, %v736_v2 }
 0x1b1   : > { %v637_v24 = vadd.f32 %v571_v20, %v332_v12  ;;  %v653_v25 = vadd.f32 %v611_v21, %v348_v13  ;;  %v573_v26 = vpop.f32.mrb[10].mxu0  ;;  %v613_v27 = vpop.f32.mrb[10].mxu1  ;;  %v700_v3 = vld [vmem:[#allocation2 + $0x20] sm:$0xff] (!%p986_p3) }
 0x1b2   : > { %668 = vst [vmem:[#allocation2 + $0x40] sm:$0xff] %v636_v18  ;;  %684 = vst [vmem:[#allocation2 + $0xc0] sm:$0xff] %v652_v19  ;;  %v638_v28 = vadd.f32 %v573_v26, %v333_v16  ;;  %v654_v29 = vadd.f32 %v613_v27, %v349_v17  ;;  %v575_v30 = vpop.f32.mrb[11].mxu0  ;;  %v615_v31 = vpop.f32.mrb[11].mxu1  ;;  %v701_v4 = vld [vmem:[#allocation2 + $0x28] sm:$0xff] (!%p986_p3)  ;;  %v712_v17 = vld [vmem:[#allocation2 + $0x80] sm:$0xff] (!%p986_p3)  ;;  %v740_v18 = vadd.f32 (!%p986_p3), %v1772_v10, %v696_v61 }
 0x1b3   : > { %669 = vst [vmem:[#allocation2 + $0x48] sm:$0xff] %v637_v24  ;;  %685 = vst [vmem:[#allocation2 + $0xc8] sm:$0xff] %v653_v25  ;;  %v639_v32 = vadd.f32 %v575_v30, %v334_v22  ;;  %v655_v33 = vadd.f32 %v615_v31, %v350_v23  ;;  %v702_v5 = vld [vmem:[#allocation2 + $0x30] sm:$0xff] (!%p986_p3)  ;;  %v741_v19 = vadd.f32 (!%p986_p3), %v1774_v11, %v697_v62  ;;  %v713_v22 = vld [vmem:[#allocation2 + $0x88] sm:$0xff] (!%p986_p3) }
 0x1b4   : > { %670 = vst [vmem:[#allocation2 + $0x50] sm:$0xff] %v638_v28  ;;  %686 = vst [vmem:[#allocation2 + $0xd0] sm:$0xff] %v654_v29  ;;  %v703_v6 = vld [vmem:[#allocation2 + $0x38] sm:$0xff] (!%p986_p3)  ;;  %v742_v20 = vadd.f32 (!%p986_p3), %v1772_v10, %v698_v63  ;;  %v743_v21 = vadd.f32 (!%p986_p3), %v1774_v11, %v699_v0  ;;  %v714_v23 = vld [vmem:[#allocation2 + $0x90] sm:$0xff] (!%p986_p3)  ;;  %v744_v25 = vadd.f32 (!%p986_p3), %v1772_v10, %v700_v3 }
 0x1b5   : > { %671 = vst [vmem:[#allocation2 + $0x58] sm:$0xff] %v639_v32  ;;  %687 = vst [vmem:[#allocation2 + $0xd8] sm:$0xff] %v655_v33  ;;  %v715_v24 = vld [vmem:[#allocation2 + $0x98] sm:$0xff] (!%p986_p3)  ;;  %v745_v26 = vadd.f32 (!%p986_p3), %v1774_v11, %v701_v4  ;;  %v746_v27 = vadd.f32 (!%p986_p3), %v1772_v10, %v702_v5  ;;  %v747_v28 = vadd.f32 (!%p986_p3), %v1774_v11, %v703_v6  ;;  %v716_v29 = vld [vmem:[#allocation2 + $0xa0] sm:$0xff] (!%p986_p3) }
 0x1b6   : > { %v717_v30 = vld [vmem:[#allocation2 + $0xa8] sm:$0xff] (!%p986_p3)  ;;  %v718_v31 = vld [vmem:[#allocation2 + $0xb0] sm:$0xff] (!%p986_p3)  ;;  %772 = vst [vmem:[%s1735_s15] sm:$0xff] (!%p986_p3), %v740_v18  ;;  %773 = vst [vmem:[%s1735_s15 + $0x8] sm:$0xff] (!%p986_p3), %v741_v19 }
 0x1b7   : > { %v579_v38 = vpop.f32.mrb[12].mxu0  ;;  %v619_v39 = vpop.f32.mrb[12].mxu1  ;;  %695 = sbr.rel (%p986_p3) target bundleno = 458 (0x1ca), region = 48  ;;  %774 = vst [vmem:[%s1735_s15 + $0x10] sm:$0xff] (!%p986_p3), %v742_v20  ;;  %775 = vst [vmem:[%s1735_s15 + $0x18] sm:$0xff] (!%p986_p3), %v743_v21 }
 0x1b8   : > { %v640_v42 = vadd.f32 %v579_v38, %v335_v34  ;;  %v656_v43 = vadd.f32 %v619_v39, %v351_v35  ;;  %v581_v44 = vpop.f32.mrb[13].mxu0  ;;  %v621_v45 = vpop.f32.mrb[13].mxu1  ;;  %776 = vst [vmem:[%s1735_s15 + $0x20] sm:$0xff] (!%p986_p3), %v744_v25  ;;  %777 = vst [vmem:[%s1735_s15 + $0x28] sm:$0xff] (!%p986_p3), %v745_v26 }
 0x1b9   : > { %v641_v48 = vadd.f32 %v581_v44, %v336_v36  ;;  %v657_v49 = vadd.f32 %v621_v45, %v352_v37  ;;  %v583_v50 = vpop.f32.mrb[14].mxu0  ;;  %v623_v51 = vpop.f32.mrb[14].mxu1  ;;  %v704_v7 = vld [vmem:[#allocation2 + $0x40] sm:$0xff] (!%p986_p3)  ;;  %v719_v36 = vld [vmem:[#allocation2 + $0xb8] sm:$0xff] (!%p986_p3)  ;;  %778 = vst [vmem:[%s1735_s15 + $0x30] sm:$0xff] (!%p986_p3), %v746_v27  ;;  %779 = vst [vmem:[%s1735_s15 + $0x38] sm:$0xff] (!%p986_p3), %v747_v28 }
 0x1ba   : > { %672 = vst [vmem:[#allocation2 + $0x60] sm:$0xff] %v640_v42  ;;  %688 = vst [vmem:[#allocation2 + $0xe0] sm:$0xff] %v656_v43  ;;  %v642_v52 = vadd.f32 %v583_v50, %v337_v40  ;;  %v658_v53 = vadd.f32 %v623_v51, %v353_v41  ;;  %v585_v54 = vpop.f32.mrb[15].mxu0  ;;  %v625_v55 = vpop.f32.mrb[15].mxu1  ;;  %v705_v8 = vld [vmem:[#allocation2 + $0x48] sm:$0xff] (!%p986_p3)  ;;  %v748_v32 = vadd.f32 (!%p986_p3), %v1772_v10, %v704_v7  ;;  %v720_v37 = vld [vmem:[#allocation2 + $0xc0] sm:$0xff] (!%p986_p3) }
 0x1bb   : > { %673 = vst [vmem:[#allocation2 + $0x68] sm:$0xff] %v641_v48  ;;  %689 = vst [vmem:[#allocation2 + $0xe8] sm:$0xff] %v657_v49  ;;  %v643_v56 = vadd.f32 %v585_v54, %v338_v46  ;;  %v659_v57 = vadd.f32 %v625_v55, %v354_v47  ;;  %v706_v9 = vld [vmem:[#allocation2 + $0x50] sm:$0xff] (!%p986_p3)  ;;  %v749_v33 = vadd.f32 (!%p986_p3), %v1774_v11, %v705_v8  ;;  %v721_v38 = vld [vmem:[#allocation2 + $0xc8] sm:$0xff] (!%p986_p3) }
 0x1bc   : > { %674 = vst [vmem:[#allocation2 + $0x70] sm:$0xff] %v642_v52  ;;  %690 = vst [vmem:[#allocation2 + $0xf0] sm:$0xff] %v658_v53  ;;  %v707_v12 = vld [vmem:[#allocation2 + $0x58] sm:$0xff] (!%p986_p3)  ;;  %v750_v34 = vadd.f32 (!%p986_p3), %v1772_v10, %v706_v9  ;;  %v722_v43 = vld [vmem:[#allocation2 + $0xd0] sm:$0xff] (!%p986_p3)  ;;  %v756_v46 = vadd.f32 (!%p986_p3), %v1772_v10, %v712_v17  ;;  %v757_v47 = vadd.f32 (!%p986_p3), %v1774_v11, %v713_v22 }
 0x1bd   : > { %675 = vst [vmem:[#allocation2 + $0x78] sm:$0xff] %v643_v56  ;;  %691 = vst [vmem:[#allocation2 + $0xf8] sm:$0xff] %v659_v57  ;;  %v751_v35 = vadd.f32 (!%p986_p3), %v1774_v11, %v707_v12  ;;  %v723_v44 = vld [vmem:[#allocation2 + $0xd8] sm:$0xff] (!%p986_p3)  ;;  %v758_v48 = vadd.f32 (!%p986_p3), %v1772_v10, %v714_v23  ;;  %v759_v49 = vadd.f32 (!%p986_p3), %v1774_v11, %v715_v24 }
 0x1be   : > { %780 = vst [vmem:[%s1735_s15 + $0x40] sm:$0xff] %v748_v32  ;;  %781 = vst [vmem:[%s1735_s15 + $0x48] sm:$0xff] %v749_v33  ;;  %v760_v53 = vadd.f32 %v1772_v10, %v716_v29  ;;  %v761_v54 = vadd.f32 %v1774_v11, %v717_v30  ;;  %v762_v55 = vadd.f32 %v1772_v10, %v718_v31 }
 0x1bf   : > { %782 = vst [vmem:[%s1735_s15 + $0x50] sm:$0xff] %v750_v34  ;;  %783 = vst [vmem:[%s1735_s15 + $0x58] sm:$0xff] %v751_v35  ;;  %v763_v56 = vadd.f32 %v1774_v11, %v719_v36  ;;  %v764_v57 = vadd.f32 %v1772_v10, %v720_v37  ;;  %v765_v58 = vadd.f32 %v1774_v11, %v721_v38 }
 0x1c0   : > { %788 = vst [vmem:[%s1735_s15 + $0x80] sm:$0xff] %v756_v46  ;;  %789 = vst [vmem:[%s1735_s15 + $0x88] sm:$0xff] %v757_v47  ;;  %v766_v59 = vadd.f32 %v1772_v10, %v722_v43  ;;  %v767_v60 = vadd.f32 %v1774_v11, %v723_v44 }
 0x1c1   : > { %v708_v13 = vld [vmem:[#allocation2 + $0x60] sm:$0xff]  ;;  %790 = vst [vmem:[%s1735_s15 + $0x90] sm:$0xff] %v758_v48  ;;  %791 = vst [vmem:[%s1735_s15 + $0x98] sm:$0xff] %v759_v49 }
 0x1c2   : > { %v709_v14 = vld [vmem:[#allocation2 + $0x68] sm:$0xff]  ;;  %v752_v39 = vadd.f32 %v1772_v10, %v708_v13  ;;  %v724_v45 = vld [vmem:[#allocation2 + $0xe0] sm:$0xff]  ;;  %792 = vst [vmem:[%s1735_s15 + $0xa0] sm:$0xff] %v760_v53  ;;  %793 = vst [vmem:[%s1735_s15 + $0xa8] sm:$0xff] %v761_v54 }
 0x1c3   : > { %v710_v15 = vld [vmem:[#allocation2 + $0x70] sm:$0xff]  ;;  %v753_v40 = vadd.f32 %v1774_v11, %v709_v14  ;;  %v725_v50 = vld [vmem:[#allocation2 + $0xe8] sm:$0xff]  ;;  %794 = vst [vmem:[%s1735_s15 + $0xb0] sm:$0xff] %v762_v55  ;;  %795 = vst [vmem:[%s1735_s15 + $0xb8] sm:$0xff] %v763_v56  ;;  %v768_v61 = vadd.f32 %v1772_v10, %v724_v45 }
 0x1c4   : > { %v711_v16 = vld [vmem:[#allocation2 + $0x78] sm:$0xff]  ;;  %v754_v41 = vadd.f32 %v1772_v10, %v710_v15  ;;  %v726_v51 = vld [vmem:[#allocation2 + $0xf0] sm:$0xff]  ;;  %784 = vst [vmem:[%s1735_s15 + $0x60] sm:$0xff] %v752_v39  ;;  %v769_v62 = vadd.f32 %v1774_v11, %v725_v50  ;;  %796 = vst [vmem:[%s1735_s15 + $0xc0] sm:$0xff] %v764_v57 }
 0x1c5   : > { %v755_v42 = vadd.f32 %v1774_v11, %v711_v16  ;;  %v727_v52 = vld [vmem:[#allocation2 + $0xf8] sm:$0xff]  ;;  %785 = vst [vmem:[%s1735_s15 + $0x68] sm:$0xff] %v753_v40  ;;  %v770_v63 = vadd.f32 %v1772_v10, %v726_v51  ;;  %797 = vst [vmem:[%s1735_s15 + $0xc8] sm:$0xff] %v765_v58 }
 0x1c6   : > { %786 = vst [vmem:[%s1735_s15 + $0x70] sm:$0xff] %v754_v41  ;;  %v771_v0 = vadd.f32 %v1774_v11, %v727_v52  ;;  %798 = vst [vmem:[%s1735_s15 + $0xd0] sm:$0xff] %v766_v59 }
 0x1c7   : > { %787 = vst [vmem:[%s1735_s15 + $0x78] sm:$0xff] %v755_v42  ;;  %799 = vst [vmem:[%s1735_s15 + $0xd8] sm:$0xff] %v767_v60 }
 0x1c8   : > { %800 = vst [vmem:[%s1735_s15 + $0xe0] sm:$0xff] %v768_v61  ;;  %801 = vst [vmem:[%s1735_s15 + $0xe8] sm:$0xff] %v769_v62 }
 0x1c9   : > { %802 = vst [vmem:[%s1735_s15 + $0xf0] sm:$0xff] %v770_v63  ;;  %803 = vst [vmem:[%s1735_s15 + $0xf8] sm:$0xff] %v771_v0 }
 0x1ca PF: > { %s1982_s16 = sld [smem:[#allocation20_spill]]  ;;  %s819_s3 = sshll.u32 %s1735_s15, 4  ;;  %s1847_s3 = int_to_ptr.vmem [resolvable:$true] %s819_s3 }
 0x1cb   : > { %s1984_s24 = sld [smem:[#allocation28_spill]]  ;;  %s1851_s30 = scalar_lea.sflag [#allocation7], %s273_s20 }
 0x1cc   : > { %s1259_s19 = scalar_lea.vmem %s1847_s3, 4096  ;;  %p1985_p12 = scmp.ne.s32.totalorder %s1966_s7, 0 }
 0x1cd   : > { %p1260_p1 = scmp.ne.s32.totalorder %s1847_s3, %s1259_s19  ;;  %s1422_s22 = smov [#allocation10]  }
 0x1ce   : > { %s1263_s25 = sshll.u32 %s1422_s22, 4  ;;  %s1264_s25 = int_to_ptr.vmem [resolvable:$false] %s1263_s25 }
 0x1cf   : > { %p1261_p9 = pnand %p1260_p1, %p1985_p12  ;;  %s1265_s8 = scalar_lea.vmem %s1264_s25, 8192 }
 0x1d0   : > { %s996_s2 = sshll.u32 %s1982_s16, 12  ;;  %p1266_p4 = scmp.lt.s32.totalorder %s1847_s3, %s1264_s25 }
 0x1d1   : > { %s1844_s26 = scalar_lea.hbm %s1984_s24, %s996_s2  ;;  %p1262_p0 = pneg %p1261_p9 }
 0x1d2   : > { %p1267_p11 = scmp.lt.s32.totalorder %s1265_s8, %s1259_s19 }
 0x1d4   : > { %p1268_p6 = por %p1267_p11, %p1266_p4 }
 0x1d6   : > { %p1269_p10 = pnand %p1268_p6, %p1262_p0 }
 0x1d8   : > { %1272 = shalt.err (!%p1269_p10)
}
 0x1d9   : > { %s1273_s20 = scalar_lea.hbm %s1844_s26, 4096  ;;  %s1277_s15 = scalar_lea.hbm %s1984_s24, 8192 }
 0x1da   : > { %p1274_p5 = scmp.ne.s32.totalorder %s1844_s26, %s1273_s20  ;;  %p1278_p8 = scmp.lt.u32.totalorder %s1844_s26, %s1984_s24 }
 0x1db   : > { %p1279_p2 = scmp.lt.u32.totalorder %s1277_s15, %s1273_s20  ;;  %p1281_p1 = scmp.lt.u32.totalorder %s1273_s20, %s1844_s26 }
 0x1dc   : > { %p1275_p13 = pnand %p1274_p5, %p1985_p12 }
 0x1dd   : > { %p1280_p3 = por %p1279_p2, %p1278_p8 }
 0x1de   : > { %p1276_p7 = pneg %p1275_p13 }
 0x1df   : > { %p1282_p9 = por %p1281_p1, %p1280_p3 }
 0x1e1   : > { %p1283_p0 = pnand %p1282_p9, %p1276_p7 }
 0x1e3   : > { %1286 = shalt.err (!%p1283_p0)
}
 0x1e4   : > { %s1423_s16 = smov 256   ;;  %s1424_s18 = smov 16  }
 0x1e5   : > { %1019 = dma.vmem_to_hbm [thread:$0]  (%p1985_p12), %s1847_s3, 4096, %s1844_s26, %s1851_s30, %s1423_s16, %s1423_s16, %s1424_s18  }
 0x1e6 PF: > { %s1986_s2 = sld [smem:[#allocation17_spill]]  ;;  %p1035_p4 = scmp.ge.s32.totalorder %s1411_s11, 2 }
 0x1e7   : > { %p1987_p11 = scmp.ne.s32.totalorder %s1968_s4, 0 }
 0x1e9   : > { %p1031_p6 = pnand %p1035_p4, %p1987_p11 }
 0x1ec   : > { %s834_s17 = sand.u32 1, %s1986_s2  }
 0x1ed   : > { %s835_s10 = scalar_lea.sflag [#allocation7], %s834_s17 }
 0x1ee   : > { %1354 = dma.done.wait (!%p1031_p6), %s835_s10, 4096  }
 0x1ef   : > { %1356 = vsyncadd (!%p1031_p6), %s835_s10, 4294963200  ;;  %s27_s11 = sadd.s32 1, %s1411_s11   ;;  %s1989_s25 = sld [smem:[#allocation18_spill]] }
 0x1f0   : > { %p1880_p10 = scmp.ge.s32.totalorder %s27_s11, 6   ;;  %s1990_s7 = sld [smem:[#allocation24_spill]] }
 0x1f1   : > { %s1991_s8 = sld [smem:[#allocation21_spill]]  ;;  %s1992_s4 = sld [smem:[#allocation22_spill]] }
 0x1f2   : > { %s1993_s10 = sld [smem:[#allocation23_spill]]  ;;  %s1994_s26 = smov %s1367_s27 }
 0x1f3   : > { %s1995_s27 = smov %s1561_s23  ;;  %s1996_s28 = smov %s1375_s29 }
 0x1f4   : > { %s1997_s29 = smov %s1379_s0  ;;  %s1998_s0 = smov %s1629_s14 }
 0x1f5   : > { %s1999_s30 = smov %s1387_s5  ;;  %s2000_s5 = smov %s1391_s6 }
 0x1f6   : > { %s2001_s6 = smov %s1990_s7  ;;  %s2002_s7 = smov %s1403_s9 }
 0x1f7   : > { %s2003_s9 = smov %s1992_s4  ;;  %26 = sbr.rel (!%p1880_p10) target bundleno = 25 (0x19), region = 101 }
 0x1fe   :  { %840 = vsyncpa [#allocation6], 1 }
 0x1ff   :  { %842 = vsyncpa [#allocation6 + $0x1], 1 }
 0x200   :  { %843 = vsyncpa [#allocation9], 1 }
 0x201   :  { %845 = vsyncpa [#allocation9 + $0x1], 1 }
 0x202   :  { %846 = vsyncpa [#allocation7], 1 }
 0x203   :  { %848 = vsyncpa [#allocation7 + $0x1], 1 }

</bundles_post_ra>
